<compile_context>
chip_gen: v7x
topology: tpu7x:2x2x1
jax: 0.10.0
libtpu: 0.0.40
codegen_flags: <defaults>
</compile_context>

<pallas_src>
import functools
import math

import jax
import jax.numpy as jnp
from jax import lax
from jax.experimental import pallas as pl
from jax.experimental.pallas import tpu as pltpu


# ----------------------------- fused Pallas kernel -------------------------- #

def _fused_attention_kernel(x_ref, w_qkv_ref, w_out_ref, b_out_ref, o_ref, *,
                            heads, dim_head, scale):
    # x block: (1, n, dim). Weights/bias are full arrays, resident in VMEM
    # (constant index_map → fetched once, reused across the batch grid).
    x = x_ref[0]              # (n, dim)      f32
    w_qkv = w_qkv_ref[...]    # (3*inner, dim)  PyTorch (out, in) layout
    w_out = w_out_ref[...]    # (dim, inner)    PyTorch (out, in) layout
    b_out = b_out_ref[...]    # (1, dim)

    inner = heads * dim_head
    # Contract the last dim of both operands: a @ b.T with no transpose copy.
    contract_last = (((1,), (1,)), ((), ()))

    # --- to_qkv: x @ W_qkv^T (bias=False) ---
    qkv = lax.dot_general(x, w_qkv, contract_last,
                          preferred_element_type=jnp.float32)      # (n, 3*inner)

    # --- per-head attention, all in VMEM ---
    head_outs = []
    for h in range(heads):                       # heads is small & static
        q_h = qkv[:, h * dim_head:(h + 1) * dim_head]                      # (n, d)
        k_h = qkv[:, inner + h * dim_head:inner + (h + 1) * dim_head]      # (n, d)
        v_h = qkv[:, 2 * inner + h * dim_head:2 * inner + (h + 1) * dim_head]

        # Fold the softmax scale into q: scales (n, d) instead of (n, n).
        dots = lax.dot_general(q_h * scale, k_h, contract_last,
                               preferred_element_type=jnp.float32)  # (n, n)
        m = jnp.max(dots, axis=-1, keepdims=True)
        e = jnp.exp(dots - m)
        denom = jnp.sum(e, axis=-1, keepdims=True)
        attn = e * pl.reciprocal(denom, approx=True)                # EUP vrcp
        out_h = jnp.dot(attn, v_h,
                        preferred_element_type=jnp.float32)         # (n, d)
        head_outs.append(out_h)

    # 'b h n d -> b n (h d)'  — lane-dense slab for the final matmul / store.
    out = jnp.concatenate(head_outs, axis=-1)                       # (n, inner)

    # --- to_out: out @ W_out^T + b  (Dropout(0.0) == identity) ---
    y = lax.dot_general(out, w_out, contract_last,
                        preferred_element_type=jnp.float32)         # (n, dim)
    y = y + b_out
    o_ref[0] = y.astype(o_ref.dtype)


# ------------------------------ wrapper ------------------------------------- #

def attention_forward(x, params, heads, dim_head):
    """Fused Pallas implementation of Attention.forward.

    x: (b, n, dim) float32
    params: dict with 'w_qkv' (3*inner, dim), 'w_out' (dim, inner), 'b_out' (dim,)
            — all kept in native PyTorch nn.Linear layout (out_features, in_features).
    """
    b, n, dim = x.shape
    inner = heads * dim_head
    scale = dim_head ** (-0.5)
    b_out2d = params["b_out"].reshape(1, dim)

    kernel = functools.partial(
        _fused_attention_kernel, heads=heads, dim_head=dim_head, scale=scale)

    return pl.pallas_call(
        kernel,
        out_shape=jax.ShapeDtypeStruct((b, n, dim), x.dtype),
        grid=(b,),
        in_specs=[
            pl.BlockSpec((1, n, dim), lambda bi: (bi, 0, 0)),       # x
            pl.BlockSpec((3 * inner, dim), lambda bi: (0, 0)),      # w_qkv
            pl.BlockSpec((dim, inner), lambda bi: (0, 0)),          # w_out
            pl.BlockSpec((1, dim), lambda bi: (0, 0)),              # b_out
        ],
        out_specs=pl.BlockSpec((1, n, dim), lambda bi: (bi, 0, 0)),
        compiler_params=pltpu.CompilerParams(
            dimension_semantics=("parallel",),                      # megacore on v7x
        ),
    )(x, params["w_qkv"], params["w_out"], b_out2d)


# ------------------------------ reference ------------------------------------ #

def attention_reference(x, params, heads, dim_head):
    b, n, dim = x.shape
    inner = heads * dim_head
    scale = dim_head ** (-0.5)
    qkv = x @ params["w_qkv"].T
    q, k, v = jnp.split(qkv, 3, axis=-1)
    to_heads = lambda t: t.reshape(b, n, heads, dim_head).transpose(0, 2, 1, 3)
    q, k, v = map(to_heads, (q, k, v))
    dots = jnp.einsum("bhid,bhjd->bhij", q, k) * scale
    attn = jax.nn.softmax(dots, axis=-1)
    out = jnp.einsum("bhij,bhjd->bhid", attn, v)
    out = out.transpose(0, 2, 1, 3).reshape(b, n, inner)
    return out @ params["w_out"].T + params["b_out"]


# -------------------------------- main --------------------------------------- #

if __name__ == "__main__":
    # Small shapes consistent with the module.
    batch, seq, dim = 2, 8, 32
    heads, dim_head = 4, 16
    inner = heads * dim_head  # 64; project_out=True since (heads,dim_head)!=(1,dim)

    key = jax.random.PRNGKey(0)
    kx, kq, kw, kb = jax.random.split(key, 4)

    x = jax.random.normal(kx, (batch, seq, dim), dtype=jnp.float32)

    # Deterministic parameter init (PyTorch-Linear-like uniform(-1/sqrt(fan_in), ...)).
    lim_qkv = 1.0 / math.sqrt(dim)
    lim_out = 1.0 / math.sqrt(inner)
    params = {
        "w_qkv": jax.random.uniform(kq, (3 * inner, dim), jnp.float32,
                                    -lim_qkv, lim_qkv),
        "w_out": jax.random.uniform(kw, (dim, inner), jnp.float32,
                                    -lim_out, lim_out),
        "b_out": jax.random.uniform(kb, (dim,), jnp.float32,
                                    -lim_out, lim_out),
    }

    y = attention_forward(x, params, heads, dim_head)
    y = jax.block_until_ready(y)

    y_ref = attention_reference(x, params, heads, dim_head)
    assert y.shape == (batch, seq, dim)
    # Tolerance slightly relaxed vs 1e-4: the softmax denominator uses the EUP
    # approximate reciprocal (pl.reciprocal(..., approx=True)).
    assert jnp.allclose(y, y_ref, atol=2e-3, rtol=2e-3), "mismatch vs reference"

    print("KERNEL_OK")
</pallas_src>

<mosaic_0001>
module attributes {stable_mosaic.version = 11 : i64} {
  func.func @_fused_attention_kernel(%arg0: i32, %arg1: memref<1x8x32xf32, #tpu.memory_space<vmem>>, %arg2: memref<192x32xf32, #tpu.memory_space<vmem>>, %arg3: memref<32x64xf32, #tpu.memory_space<vmem>>, %arg4: memref<1x32xf32, #tpu.memory_space<vmem>>, %arg5: memref<1x8x32xf32, #tpu.memory_space<vmem>>) attributes {dimension_semantics = [#tpu.dimension_semantics<parallel>], iteration_bounds = array<i64: 2>, scalar_prefetch = 0 : i64, scratch_operands = 0 : i64, tpu.core_type = #tpu.core_type<tc>, window_params = [{transform_indices = @transform_0, window_bounds = array<i64: 1, 8, 32>}, {pipeline_mode = #tpu.pipeline_mode<synchronous>, transform_indices = @transform_1, window_bounds = array<i64: 192, 32>}, {pipeline_mode = #tpu.pipeline_mode<synchronous>, transform_indices = @transform_2, window_bounds = array<i64: 32, 64>}, {pipeline_mode = #tpu.pipeline_mode<synchronous>, transform_indices = @transform_3, window_bounds = array<i64: 1, 32>}, {transform_indices = @transform_4, window_bounds = array<i64: 1, 8, 32>}]} {
    %c0 = arith.constant 0 : index
    %c0_0 = arith.constant 0 : index
    %c0_1 = arith.constant 0 : index
    %0 = vector.load %arg1[%c0, %c0_0, %c0_1] : memref<1x8x32xf32, #tpu.memory_space<vmem>>, vector<1x8x32xf32>
    %1 = vector.shape_cast %0 : vector<1x8x32xf32> to vector<8x32xf32>
    %c0_2 = arith.constant 0 : index
    %c0_3 = arith.constant 0 : index
    %2 = vector.load %arg2[%c0_2, %c0_3] : memref<192x32xf32, #tpu.memory_space<vmem>>, vector<192x32xf32>
    %c0_4 = arith.constant 0 : index
    %c0_5 = arith.constant 0 : index
    %3 = vector.load %arg3[%c0_4, %c0_5] : memref<32x64xf32, #tpu.memory_space<vmem>>, vector<32x64xf32>
    %c0_6 = arith.constant 0 : index
    %c0_7 = arith.constant 0 : index
    %4 = vector.load %arg4[%c0_6, %c0_7] : memref<1x32xf32, #tpu.memory_space<vmem>>, vector<1x32xf32>
    %cst = arith.constant dense<0.000000e+00> : vector<8x192xf32>
    %5 = tpu.matmul %1, %2, %cst {dimension_numbers = #tpu.dot_dimension_numbers<[1], [1], [0], [0], [0, 0, 1, 0], [], []>} : vector<8x32xf32>, vector<192x32xf32>, vector<8x192xf32> -> vector<8x192xf32>
    %6 = vector.extract_strided_slice %5 {offsets = [0, 0], sizes = [8, 16], strides = [1, 1]} : vector<8x192xf32> to vector<8x16xf32>
    %7 = vector.extract_strided_slice %5 {offsets = [0, 64], sizes = [8, 16], strides = [1, 1]} : vector<8x192xf32> to vector<8x16xf32>
    %8 = vector.extract_strided_slice %5 {offsets = [0, 128], sizes = [8, 16], strides = [1, 1]} : vector<8x192xf32> to vector<8x16xf32>
    %cst_8 = arith.constant 2.500000e-01 : f32
    %9 = vector.broadcast %cst_8 : f32 to vector<8x16xf32>
    %10 = arith.mulf %6, %9 : vector<8x16xf32>
    %cst_9 = arith.constant dense<0.000000e+00> : vector<8x8xf32>
    %11 = tpu.matmul %10, %7, %cst_9 {dimension_numbers = #tpu.dot_dimension_numbers<[1], [1], [0], [0], [0, 0, 1, 0], [], []>} : vector<8x16xf32>, vector<8x16xf32>, vector<8x8xf32> -> vector<8x8xf32>
    %cst_10 = arith.constant dense<0xFF800000> : vector<8xf32>
    %12 = vector.multi_reduction <maximumf>, %11, %cst_10 [1] : vector<8x8xf32> to vector<8xf32>
    %13 = vector.shape_cast %12 : vector<8xf32> to vector<8x1xf32>
    %14 = vector.broadcast %13 : vector<8x1xf32> to vector<8x8xf32>
    %15 = arith.subf %11, %14 : vector<8x8xf32>
    %16 = math.exp %15 : vector<8x8xf32>
    %cst_11 = arith.constant dense<0.000000e+00> : vector<8xf32>
    %17 = vector.multi_reduction <add>, %16, %cst_11 [1] : vector<8x8xf32> to vector<8xf32>
    %18 = vector.shape_cast %17 : vector<8xf32> to vector<8x1xf32>
    %19 = tpu.reciprocal %18 {approx = true} : vector<8x1xf32> -> vector<8x1xf32>
    %20 = vector.broadcast %19 : vector<8x1xf32> to vector<8x8xf32>
    %21 = arith.mulf %16, %20 : vector<8x8xf32>
    %cst_12 = arith.constant dense<0.000000e+00> : vector<8x16xf32>
    %22 = tpu.matmul %21, %8, %cst_12 {dimension_numbers = #tpu.dot_dimension_numbers<[1], [0], [0], [1], [0, 0, 1, 1], [], []>} : vector<8x8xf32>, vector<8x16xf32>, vector<8x16xf32> -> vector<8x16xf32>
    %23 = vector.extract_strided_slice %5 {offsets = [0, 16], sizes = [8, 16], strides = [1, 1]} : vector<8x192xf32> to vector<8x16xf32>
    %24 = vector.extract_strided_slice %5 {offsets = [0, 80], sizes = [8, 16], strides = [1, 1]} : vector<8x192xf32> to vector<8x16xf32>
    %25 = vector.extract_strided_slice %5 {offsets = [0, 144], sizes = [8, 16], strides = [1, 1]} : vector<8x192xf32> to vector<8x16xf32>
    %cst_13 = arith.constant 2.500000e-01 : f32
    %26 = vector.broadcast %cst_13 : f32 to vector<8x16xf32>
    %27 = arith.mulf %23, %26 : vector<8x16xf32>
    %cst_14 = arith.constant dense<0.000000e+00> : vector<8x8xf32>
    %28 = tpu.matmul %27, %24, %cst_14 {dimension_numbers = #tpu.dot_dimension_numbers<[1], [1], [0], [0], [0, 0, 1, 0], [], []>} : vector<8x16xf32>, vector<8x16xf32>, vector<8x8xf32> -> vector<8x8xf32>
    %cst_15 = arith.constant dense<0xFF800000> : vector<8xf32>
    %29 = vector.multi_reduction <maximumf>, %28, %cst_15 [1] : vector<8x8xf32> to vector<8xf32>
    %30 = vector.shape_cast %29 : vector<8xf32> to vector<8x1xf32>
    %31 = vector.broadcast %30 : vector<8x1xf32> to vector<8x8xf32>
    %32 = arith.subf %28, %31 : vector<8x8xf32>
    %33 = math.exp %32 : vector<8x8xf32>
    %cst_16 = arith.constant dense<0.000000e+00> : vector<8xf32>
    %34 = vector.multi_reduction <add>, %33, %cst_16 [1] : vector<8x8xf32> to vector<8xf32>
    %35 = vector.shape_cast %34 : vector<8xf32> to vector<8x1xf32>
    %36 = tpu.reciprocal %35 {approx = true} : vector<8x1xf32> -> vector<8x1xf32>
    %37 = vector.broadcast %36 : vector<8x1xf32> to vector<8x8xf32>
    %38 = arith.mulf %33, %37 : vector<8x8xf32>
    %cst_17 = arith.constant dense<0.000000e+00> : vector<8x16xf32>
    %39 = tpu.matmul %38, %25, %cst_17 {dimension_numbers = #tpu.dot_dimension_numbers<[1], [0], [0], [1], [0, 0, 1, 1], [], []>} : vector<8x8xf32>, vector<8x16xf32>, vector<8x16xf32> -> vector<8x16xf32>
    %40 = vector.extract_strided_slice %5 {offsets = [0, 32], sizes = [8, 16], strides = [1, 1]} : vector<8x192xf32> to vector<8x16xf32>
    %41 = vector.extract_strided_slice %5 {offsets = [0, 96], sizes = [8, 16], strides = [1, 1]} : vector<8x192xf32> to vector<8x16xf32>
    %42 = vector.extract_strided_slice %5 {offsets = [0, 160], sizes = [8, 16], strides = [1, 1]} : vector<8x192xf32> to vector<8x16xf32>
    %cst_18 = arith.constant 2.500000e-01 : f32
    %43 = vector.broadcast %cst_18 : f32 to vector<8x16xf32>
    %44 = arith.mulf %40, %43 : vector<8x16xf32>
    %cst_19 = arith.constant dense<0.000000e+00> : vector<8x8xf32>
    %45 = tpu.matmul %44, %41, %cst_19 {dimension_numbers = #tpu.dot_dimension_numbers<[1], [1], [0], [0], [0, 0, 1, 0], [], []>} : vector<8x16xf32>, vector<8x16xf32>, vector<8x8xf32> -> vector<8x8xf32>
    %cst_20 = arith.constant dense<0xFF800000> : vector<8xf32>
    %46 = vector.multi_reduction <maximumf>, %45, %cst_20 [1] : vector<8x8xf32> to vector<8xf32>
    %47 = vector.shape_cast %46 : vector<8xf32> to vector<8x1xf32>
    %48 = vector.broadcast %47 : vector<8x1xf32> to vector<8x8xf32>
    %49 = arith.subf %45, %48 : vector<8x8xf32>
    %50 = math.exp %49 : vector<8x8xf32>
    %cst_21 = arith.constant dense<0.000000e+00> : vector<8xf32>
    %51 = vector.multi_reduction <add>, %50, %cst_21 [1] : vector<8x8xf32> to vector<8xf32>
    %52 = vector.shape_cast %51 : vector<8xf32> to vector<8x1xf32>
    %53 = tpu.reciprocal %52 {approx = true} : vector<8x1xf32> -> vector<8x1xf32>
    %54 = vector.broadcast %53 : vector<8x1xf32> to vector<8x8xf32>
    %55 = arith.mulf %50, %54 : vector<8x8xf32>
    %cst_22 = arith.constant dense<0.000000e+00> : vector<8x16xf32>
    %56 = tpu.matmul %55, %42, %cst_22 {dimension_numbers = #tpu.dot_dimension_numbers<[1], [0], [0], [1], [0, 0, 1, 1], [], []>} : vector<8x8xf32>, vector<8x16xf32>, vector<8x16xf32> -> vector<8x16xf32>
    %57 = vector.extract_strided_slice %5 {offsets = [0, 48], sizes = [8, 16], strides = [1, 1]} : vector<8x192xf32> to vector<8x16xf32>
    %58 = vector.extract_strided_slice %5 {offsets = [0, 112], sizes = [8, 16], strides = [1, 1]} : vector<8x192xf32> to vector<8x16xf32>
    %59 = vector.extract_strided_slice %5 {offsets = [0, 176], sizes = [8, 16], strides = [1, 1]} : vector<8x192xf32> to vector<8x16xf32>
    %cst_23 = arith.constant 2.500000e-01 : f32
    %60 = vector.broadcast %cst_23 : f32 to vector<8x16xf32>
    %61 = arith.mulf %57, %60 : vector<8x16xf32>
    %cst_24 = arith.constant dense<0.000000e+00> : vector<8x8xf32>
    %62 = tpu.matmul %61, %58, %cst_24 {dimension_numbers = #tpu.dot_dimension_numbers<[1], [1], [0], [0], [0, 0, 1, 0], [], []>} : vector<8x16xf32>, vector<8x16xf32>, vector<8x8xf32> -> vector<8x8xf32>
    %cst_25 = arith.constant dense<0xFF800000> : vector<8xf32>
    %63 = vector.multi_reduction <maximumf>, %62, %cst_25 [1] : vector<8x8xf32> to vector<8xf32>
    %64 = vector.shape_cast %63 : vector<8xf32> to vector<8x1xf32>
    %65 = vector.broadcast %64 : vector<8x1xf32> to vector<8x8xf32>
    %66 = arith.subf %62, %65 : vector<8x8xf32>
    %67 = math.exp %66 : vector<8x8xf32>
    %cst_26 = arith.constant dense<0.000000e+00> : vector<8xf32>
    %68 = vector.multi_reduction <add>, %67, %cst_26 [1] : vector<8x8xf32> to vector<8xf32>
    %69 = vector.shape_cast %68 : vector<8xf32> to vector<8x1xf32>
    %70 = tpu.reciprocal %69 {approx = true} : vector<8x1xf32> -> vector<8x1xf32>
    %71 = vector.broadcast %70 : vector<8x1xf32> to vector<8x8xf32>
    %72 = arith.mulf %67, %71 : vector<8x8xf32>
    %cst_27 = arith.constant dense<0.000000e+00> : vector<8x16xf32>
    %73 = tpu.matmul %72, %59, %cst_27 {dimension_numbers = #tpu.dot_dimension_numbers<[1], [0], [0], [1], [0, 0, 1, 1], [], []>} : vector<8x8xf32>, vector<8x16xf32>, vector<8x16xf32> -> vector<8x16xf32>
    %74 = tpu.concatenate %22, %39, %56, %73 in 1 : vector<8x16xf32>, vector<8x16xf32>, vector<8x16xf32>, vector<8x16xf32> -> vector<8x64xf32>
    %cst_28 = arith.constant dense<0.000000e+00> : vector<8x32xf32>
    %75 = tpu.matmul %74, %3, %cst_28 {dimension_numbers = #tpu.dot_dimension_numbers<[1], [1], [0], [0], [0, 0, 1, 0], [], []>} : vector<8x64xf32>, vector<32x64xf32>, vector<8x32xf32> -> vector<8x32xf32>
    %76 = vector.broadcast %4 : vector<1x32xf32> to vector<8x32xf32>
    %77 = arith.addf %75, %76 : vector<8x32xf32>
    %c0_29 = arith.constant 0 : index
    %c0_30 = arith.constant 0 : index
    %c0_31 = arith.constant 0 : index
    %78 = vector.load %arg5[%c0_29, %c0_30, %c0_31] : memref<1x8x32xf32, #tpu.memory_space<vmem>>, vector<1x8x32xf32>
    %79 = vector.shape_cast %78 : vector<1x8x32xf32> to vector<8x32xf32>
    %80 = vector.shape_cast %77 : vector<8x32xf32> to vector<1x8x32xf32>
    tpu.vector_store %arg5[%c0_29, %c0_30, %c0_31], %80 {strides = array<i32>} : memref<1x8x32xf32, #tpu.memory_space<vmem>>, vector<1x8x32xf32>,
    return
  }
  func.func @transform_0(%arg0: i32) -> (i32, i32, i32) {
    %c0_i32 = arith.constant 0 : i32
    %c0_i32_0 = arith.constant 0 : i32
    %c0_i32_1 = arith.constant 0 : i32
    return %arg0, %c0_i32, %c0_i32_0 : i32, i32, i32
  }
  func.func @transform_1(%arg0: i32) -> (i32, i32) {
    %c0_i32 = arith.constant 0 : i32
    %c0_i32_0 = arith.constant 0 : i32
    %c0_i32_1 = arith.constant 0 : i32
    return %c0_i32, %c0_i32_0 : i32, i32
  }
  func.func @transform_2(%arg0: i32) -> (i32, i32) {
    %c0_i32 = arith.constant 0 : i32
    %c0_i32_0 = arith.constant 0 : i32
    %c0_i32_1 = arith.constant 0 : i32
    return %c0_i32, %c0_i32_0 : i32, i32
  }
  func.func @transform_3(%arg0: i32) -> (i32, i32) {
    %c0_i32 = arith.constant 0 : i32
    %c0_i32_0 = arith.constant 0 : i32
    %c0_i32_1 = arith.constant 0 : i32
    return %c0_i32, %c0_i32_0 : i32, i32
  }
  func.func @transform_4(%arg0: i32) -> (i32, i32, i32) {
    %c0_i32 = arith.constant 0 : i32
    %c0_i32_0 = arith.constant 0 : i32
    %c0_i32_1 = arith.constant 0 : i32
    return %arg0, %c0_i32, %c0_i32_0 : i32, i32, i32
  }
}

</mosaic_0001>

<bundles_post_ra>
// kernel: tpu_custom_call.1
= control target key start
LH: loop header
LB: loop body
LE: loop exit
PB: predicated region body
PF: predicated region fallthrough
CT: control target
= control target key end

     0   :  { %9 = vsyncpa [#allocation3], 0  ;;  %s1874_s0 = inlined_call_operand.vmem [shape: f32[2,8,32], index: 0, kind: input, shape index: {}]   ;;  %s1875_s1 = inlined_call_operand.vmem [shape: f32[192,32], index: 1, kind: input, shape index: {}]   ;;  %s1876_s2 = inlined_call_operand.vmem [shape: f32[32,64], index: 2, kind: input, shape index: {}]   ;;  %s1877_s3 = inlined_call_operand.vmem [shape: f32[1,32], index: 3, kind: input, shape index: {}]   ;;  %s1878_s4 = inlined_call_operand.hbm [shape: f32[2,8,32], index: 4, kind: output, shape index: {}]  }
   0x1   :  { %11 = vsyncpa [#allocation3 + $0x1], 0  ;;  %s1559_s15 = smov 0   ;;  %s1561_s16 = smov 0  }
   0x2   :  { %s1563_s17 = smov 0   ;;  %s1565_s18 = smov 0  }
   0x3 LB: > { %s1580_s19 = sadd.s32 4294967295, %s1521_s18   ;;  %s1213_s20 = sadd.s32 4294967294, %s1521_s18   ;;  %s1521_s18 = sphi %s1565_s18, %s1886_s18   ;;  %s1517_s17 = sphi %s1563_s17, %s1885_s17   ;;  %s1513_s16 = sphi %s1561_s16, %s1884_s16   ;;  %s1509_s15 = sphi %s1559_s15, %s1883_s15  }
   0x4   : > { %s1584_s21 = sadd.s32 1, %s1521_s18   ;;  %s113_s22 = sadd.s32 1, %s1517_s17 }
   0x5   : > { %s110_s23 = ssub.s32 %s1521_s18, %s1584_s21  ;;  %p123_p0 = scmp.ne.s32.totalorder %s1517_s17, %s1513_s16 }
   0x6   : > { %p111_p1 = scmp.eq.s32.totalorder %s110_s23, 0  ;;  %p124_p2 = scmp.eq.s32.totalorder %s1580_s19, 1 }
   0x7   : > { %p129_p3 = scmp.ne.s32.totalorder %s1513_s16, %s1509_s15  ;;  %p130_p4 = scmp.eq.s32.totalorder %s1213_s20, 1 }
   0x8   : > { %s1595_s24 = scalar_select %p111_p1, %s1517_s17, %s113_s22  }
   0x9   : > { %p1597_p5 = por %p124_p2, %p123_p0  ;;  %p1601_p6 = por %p130_p4, %p129_p3 }
   0xa   : > { %p1216_p7 = scmp.ge.s32.totalorder %s1521_s18, 1  ;;  %p164_p8 = scmp.lt.s32.totalorder %s1521_s18, 3 }
   0xc   : > { %p165_p9 = pnand %p1216_p7, %p164_p8 }
   0xd   : > { %v194_v0 = vld [vmem:[%s1875_s1] sm:$0xff] (!%p165_p9)  ;;  %v195_v1 = vld [vmem:[%s1875_s1 + $0x8] sm:$0xff] (!%p165_p9)  ;;  %vm223_vm0 = vcmask (!%p165_p9), 261120   ;;  %v1523_v2 = vmov (!%p165_p9), 0.0|0.0   ;;  %v1524_v5 = vmov (!%p165_p9), 0.0   ;;  %v196_v6 = vld [vmem:[%s1875_s1 + $0x10] sm:$0xff] (!%p165_p9) }
   0xe   : > { %168 = sbr.rel (%p165_p9) target bundleno = 3113 (0xc29), region = 36  ;;  %1338 = vmatprep.subr.bf16.mxu0 (!%p165_p9), %v1523_v2  ;;  %v1339_v3 = vpack.c.bf16 (!%p165_p9), %v195_v1, %v194_v0  ;;  %vm1616_vm1 = vmpackc.low (!%p165_p9), %vm223_vm0, %vm223_vm0  ;;  %363 = vmatprep.mubr.f32.mxu0 (!%p165_p9), %v1524_v5  ;;  %v197_v7 = vld [vmem:[%s1875_s1 + $0x18] sm:$0xff] (!%p165_p9)  ;;  %v198_v9 = vld [vmem:[%s1875_s1 + $0x20] sm:$0xff] (!%p165_p9)  ;;  %p189_p10 = scmp.lt.s32.totalorder (!%p165_p9), %s1580_s19, 1  ;;  %vm1525_vm2 = vmmov (!%p165_p9), 0   ;;  %vm374_vm3 = vcmask (!%p165_p9), 130048  }
   0xf   : > { %1287 = vmatprep.subr.mxu1 (!%p165_p9), %v1524_v5  ;;  %v1343_v8 = vpack.c.bf16 (!%p165_p9), %v197_v7, %v196_v6  ;;  %v199_v10 = vld [vmem:[%s1875_s1 + $0x28] sm:$0xff] (!%p165_p9)  ;;  %v200_v12 = vld [vmem:[%s1875_s1 + $0x30] sm:$0xff] (!%p165_p9)  ;;  %v201_v13 = vld [vmem:[%s1875_s1 + $0x38] sm:$0xff] (!%p165_p9)  ;;  %1289 = vmatprep.mubr.msk.f32.mxu1 (!%p165_p9), %vm1525_vm2, %v1524_v5  ;;  %s1526_s29 = smov (!%p165_p9), 48   ;;  %s1527_s30 = smov (!%p165_p9), 64   ;;  %vm450_vm4 = vcmask (!%p165_p9), 64512  }
  0x10   : > { %1341 = vmatpush1.bf16.xpose.msk.msra.mxu0 (!%p165_p9), %vm1616_vm1, %v1339_v3  ;;  %v1347_v11 = vpack.c.bf16 (!%p165_p9), %v199_v10, %v198_v9  ;;  %v1351_v14 = vpack.c.bf16 (!%p165_p9), %v201_v13, %v200_v12  ;;  %v202_v15 = vld [vmem:[%s1875_s1 + $0x40] sm:$0xff] (!%p165_p9)  ;;  %v203_v16 = vld [vmem:[%s1875_s1 + $0x48] sm:$0xff] (!%p165_p9)  ;;  %v204_v18 = vld [vmem:[%s1875_s1 + $0x50] sm:$0xff] (!%p165_p9)  ;;  %s1528_s5 = smov (!%p165_p9), 112   ;;  %s1529_s6 = smov (!%p165_p9), 96   ;;  %vm1053_vm5 = vcmask (!%p165_p9), 523264  }
  0x11   : > { %1342 = vmatprep.subr.bf16.mxu0 (!%p165_p9), %v1523_v2  ;;  %v1355_v17 = vpack.c.bf16 (!%p165_p9), %v203_v16, %v202_v15  ;;  %v205_v19 = vld [vmem:[%s1875_s1 + $0x58] sm:$0xff] (!%p165_p9)  ;;  %v206_v21 = vld [vmem:[%s1875_s1 + $0x60] sm:$0xff] (!%p165_p9)  ;;  %v207_v22 = vld [vmem:[%s1875_s1 + $0x68] sm:$0xff] (!%p165_p9)  ;;  %s1530_s7 = smov (!%p165_p9), 32   ;;  %s1531_s8 = smov (!%p165_p9), 80   ;;  %vm1045_vm7 = vcmask (!%p165_p9), 392192  }
  0x12   : > { %v1359_v20 = vpack.c.bf16 (!%p165_p9), %v205_v19, %v204_v18  ;;  %v1363_v23 = vpack.c.bf16 (!%p165_p9), %v207_v22, %v206_v21  ;;  %v208_v24 = vld [vmem:[%s1875_s1 + $0x70] sm:$0xff] (!%p165_p9)  ;;  %v209_v25 = vld [vmem:[%s1875_s1 + $0x78] sm:$0xff] (!%p165_p9)  ;;  %v210_v27 = vld [vmem:[%s1875_s1 + $0x80] sm:$0xff] (!%p165_p9)  ;;  %s1532_s9 = smov (!%p165_p9), 16   ;;  %s186_s27 = sand.u32 (!%p165_p9), 1, %s1513_s16  }
  0x13   : > { %v1367_v26 = vpack.c.bf16 (!%p165_p9), %v209_v25, %v208_v24  ;;  %v211_v28 = vld [vmem:[%s1875_s1 + $0x88] sm:$0xff] (!%p165_p9)  ;;  %v212_v30 = vld [vmem:[%s1875_s1 + $0x90] sm:$0xff] (!%p165_p9)  ;;  %v213_v31 = vld [vmem:[%s1875_s1 + $0x98] sm:$0xff] (!%p165_p9)  ;;  %s1141_s11 = scalar_lea.sflag (!%p165_p9), [#allocation3], %s186_s27 }
  0x14   : > { %v1371_v29 = vpack.c.bf16 (!%p165_p9), %v211_v28, %v210_v27  ;;  %v1375_v32 = vpack.c.bf16 (!%p165_p9), %v213_v31, %v212_v30  ;;  %v214_v33 = vld [vmem:[%s1875_s1 + $0xa0] sm:$0xff] (!%p165_p9)  ;;  %v215_v34 = vld [vmem:[%s1875_s1 + $0xa8] sm:$0xff] (!%p165_p9)  ;;  %v216_v36 = vld [vmem:[%s1875_s1 + $0xb0] sm:$0xff] (!%p165_p9) }
  0x15   : > { %v1379_v35 = vpack.c.bf16 %v215_v34, %v214_v33  ;;  %v217_v37 = vld [vmem:[%s1875_s1 + $0xb8] sm:$0xff]  ;;  %s190_s20 = scalar_select %p189_p10, %s1580_s19, 1  ;;  %vm1388_vm6 = vmpackc.low %vm1053_vm5, %vm1053_vm5 }
  0x16   : > { %v1383_v38 = vpack.c.bf16 %v217_v37, %v216_v36 }
  0x17   : > { %s1218_s22 = sshll.u32 %s190_s20, 3 }
  0x18   : > { %1345 = vmatpush1.bf16.xpose.msk.msra.mxu0 %vm1616_vm1, %v1343_v8  ;;  %s192_s28 = scalar_lea.vmem %s1874_s0, %s1218_s22 }
  0x19   : > { %1346 = vmatprep.subr.bf16.mxu0 %v1523_v2  ;;  %v193_v39 = vld [vmem:[%s192_s28] sm:$0xff]  ;;  %s1217_s28 = sshll.u32 %s186_s27, 3 }
  0x20   : > { %1349 = vmatpush1.bf16.xpose.msk.msra.mxu0 %vm1616_vm1, %v1347_v11 }
  0x21   : > { %1350 = vmatprep.subr.bf16.mxu0 %v1523_v2 }
  0x28   : > { %1353 = vmatpush1.bf16.xpose.msk.msra.mxu0 %vm1616_vm1, %v1351_v14 }
  0x29   : > { %1354 = vmatprep.subr.bf16.mxu0 %v1523_v2 }
  0x30   : > { %1357 = vmatpush1.bf16.xpose.msk.msra.mxu0 %vm1616_vm1, %v1355_v17 }
  0x31   : > { %1358 = vmatprep.subr.bf16.mxu0 %v1523_v2 }
  0x38   : > { %1361 = vmatpush1.bf16.xpose.msk.msra.mxu0 %vm1616_vm1, %v1359_v20 }
  0x39   : > { %1362 = vmatprep.subr.bf16.mxu0 %v1523_v2 }
  0x40   : > { %1365 = vmatpush1.bf16.xpose.msk.msra.mxu0 %vm1616_vm1, %v1363_v23 }
  0x41   : > { %1366 = vmatprep.subr.bf16.mxu0 %v1523_v2 }
  0x48   : > { %1369 = vmatpush1.bf16.xpose.msk.msra.mxu0 %vm1616_vm1, %v1367_v26 }
  0x49   : > { %1370 = vmatprep.subr.bf16.mxu0 %v1523_v2 }
  0x50   : > { %1373 = vmatpush1.bf16.xpose.msk.msra.mxu0 %vm1616_vm1, %v1371_v29 }
  0x51   : > { %1374 = vmatprep.subr.bf16.mxu0 %v1523_v2 }
  0x58   : > { %1377 = vmatpush1.bf16.xpose.msk.msra.mxu0 %vm1616_vm1, %v1375_v32 }
  0x59   : > { %1378 = vmatprep.subr.bf16.mxu0 %v1523_v2 }
  0x60   : > { %1381 = vmatpush1.bf16.xpose.msk.msra.mxu0 %vm1616_vm1, %v1379_v35 }
  0x61   : > { %1382 = vmatprep.subr.bf16.mxu0 %v1523_v2 }
  0x68   : > { %1385 = vmatpush1.bf16.xpose.msk.msra.mxu0 %vm1616_vm1, %v1383_v38 }
  0x6f   : > { %1243 = vmatmul.mubr.msk.f32.vlgmr.msra.gmra.mrb[0].mxu0 %vm223_vm0, %v193_v39 }
 0x142   : > { %v1731_v40 = vpop.f32.mrb[0].mxu0 }
 0x143   : > { %537 = vrot.lane.b32.xlu1 %v1731_v40, %s1526_s29  ;;  %372 = vrot.lane.b32.xlu0 %v1731_v40, %s1527_s30  ;;  %v1736_v41 = vpop.f32.mrb[1].mxu0  ;;  %v1740_v43 = vmul.f32 0.25, %v1731_v40 }
 0x1b5   : > { %v373_v42 = vpop.permute.xlu0 %372  ;;  %v538_v52 = vpop.permute.xlu1 %537 }
 0x1b6   : > { %1288 = vmatpush3.xpose.msk.msra.mxu1 %vm374_vm3, %v373_v42  ;;  %v219_v42 = vld [vmem:[%s1876_s2 + $0x8] sm:$0xff] }
 0x1b7   : > { %1292 = vmatprep.subr.mxu1 %v1524_v5 }
 0x1b9   : > { %1290 = vmatmul.mubr.msk.f32.vlgmr.msra.gmra.mrb[0].mxu1 %vm374_vm3, %v1740_v43 }
 0x1ba   : > { %1293 = vmatpush3.msra.mxu1 %v1736_v41  ;;  %1294 = vmatprep.mubr.msk.f32.mxu1 %vm1525_vm2, %v1524_v5 }
 0x1bb   : > { %1297 = vmatprep.subr.mxu1 %v1524_v5 }
 0x28c   : > { %v446_v44 = vpop.f32.mrb[0].mxu1 }
 0x28d   : > { %v1291_v45 = vpop.f32.mrb[1].mxu1  ;;  %v451_v46 = vsel %vm450_vm4, %v446_v44, -inf }
 0x28e   : > { %452 = vmax.xlane.f32.xlu0 %v451_v46 }
 0x2a4   : > { %625 = vrot.lane.b32.xlu0 %v1736_v41, %s1528_s5 }
 0x31b   : > { %v453_v47 = vpop.xlane.xlu0 %452 }
 0x31c   : > { %v454_v48 = vsub.f32 %v446_v44, %v453_v47  ;;  %v221_v44 = vld [vmem:[%s1876_s2 + $0x18] sm:$0xff] }
 0x31e   : > { %v455_v49 = vmul.f32 1.442695, %v454_v48 }
 0x31f   : > { %v626_v57 = vpop.permute.xlu0 %625 }
 0x320   : > { %1443 = vpow2.f32 %v455_v49 }
 0x32a   : > { %v1444_v50 = vpop.eup %1443 }
 0x32b   : > { %v457_v51 = vsel %vm450_vm4, %v1444_v50, 0.0 }
 0x32c   : > { %458 = vadd.xlane.f32.xlu1 %v457_v51 }
 0x33d   : > { %535 = vrot.lane.b32.xlu1 %v1740_v43, %s1528_s5 }
 0x3b9   : > { %v459_v53 = vpop.xlane.xlu1 %458 }
 0x3ba   : > { %1445 = vrcp.f32 %v459_v53  ;;  %v1256_v53 = vld [vmem:[%s1877_s3] ss:$0 sm:$0xff] }
 0x3bd   : > { %v536_v56 = vpop.permute.xlu1 %535 }
 0x3c4   : > { %v1446_v54 = vpop.eup %1445 }
 0x3c5   : > { %v461_v55 = vmul.f32 %v1446_v54, %v1444_v50 }
 0x3c7   : > { %1295 = vmatmul.mubr.msk.f32.vlgmr.msra.gmra.mrb[2].mxu1 %vm450_vm4, %v461_v55 }
 0x3c8   : > { %1298 = vmatpush3.xpose.msk.msra.mxu1 %vm374_vm3, %v538_v52  ;;  %1299 = vmatprep.mubr.msk.f32.mxu1 %vm1525_vm2, %v1524_v5 }
 0x3c9   : > { %1302 = vmatprep.subr.mxu1 %v1524_v5 }
 0x3cb   : > { %1300 = vmatmul.mubr.msk.f32.vlgmr.msra.gmra.mrb[4].mxu1 %vm374_vm3, %v536_v56 }
 0x3cc   : > { %1303 = vmatpush3.msra.mxu1 %v626_v57  ;;  %1304 = vmatprep.mubr.msk.f32.mxu1 %vm1525_vm2, %v1524_v5 }
 0x3cd   : > { %1307 = vmatprep.subr.mxu1 %v1524_v5 }
 0x49a   : > { %v1762_v58 = vpop.f32.mrb[2].mxu1 }
 0x49b   : > { %v1296_v59 = vpop.f32.mrb[3].mxu1 }
 0x49e   : > { %v609_v60 = vpop.f32.mrb[4].mxu1 }
 0x49f   : > { %v1301_v61 = vpop.f32.mrb[5].mxu1  ;;  %v613_v62 = vsel %vm450_vm4, %v609_v60, -inf }
 0x4a0   : > { %614 = vmax.xlane.f32.xlu1 %v613_v62 }
 0x4b1   : > { %701 = vrot.lane.b32.xlu1 %v1740_v43, %s1529_s6 }
 0x52d   : > { %v615_v63 = vpop.xlane.xlu1 %614 }
 0x52e   : > { %v616_v0 = vsub.f32 %v609_v60, %v615_v63 }
 0x530   : > { %v617_v1 = vmul.f32 1.442695, %v616_v0 }
 0x531   : > { %v702_v10 = vpop.permute.xlu1 %701 }
 0x532   : > { %1447 = vpow2.f32 %v617_v1 }
 0x53c   : > { %v1448_v3 = vpop.eup %1447 }
 0x53d   : > { %v619_v4 = vsel %vm450_vm4, %v1448_v3, 0.0 }
 0x53e   : > { %620 = vadd.xlane.f32.xlu0 %v619_v4 }
 0x554   : > { %703 = vrot.lane.b32.xlu0 %v1731_v40, %s1530_s7 }
 0x5cb   : > { %v621_v6 = vpop.xlane.xlu0 %620 }
 0x5cc   : > { %1449 = vrcp.f32 %v621_v6 }
 0x5cf   : > { %v704_v9 = vpop.permute.xlu0 %703 }
 0x5d6   : > { %v1450_v7 = vpop.eup %1449 }
 0x5d7   : > { %v623_v8 = vmul.f32 %v1450_v7, %v1448_v3 }
 0x5d9   : > { %1305 = vmatmul.mubr.msk.f32.vlgmr.msra.gmra.mrb[6].mxu1 %vm450_vm4, %v623_v8 }
 0x5da   : > { %1308 = vmatpush3.xpose.msk.msra.mxu1 %vm374_vm3, %v704_v9  ;;  %1309 = vmatprep.mubr.msk.f32.mxu1 %vm1525_vm2, %v1524_v5 }
 0x5db   : > { %1312 = vmatprep.subr.mxu1 %v1524_v5 }
 0x5dd   : > { %1310 = vmatmul.mubr.msk.f32.vlgmr.msra.gmra.mrb[8].mxu1 %vm374_vm3, %v702_v10 }
 0x5de   : > { %1314 = vmatprep.mubr.msk.f32.mxu1 %vm1525_vm2, %v1524_v5 }
 0x6ac   : > { %v697_v11 = vpop.f32.mrb[6].mxu1 }
 0x6ad   : > { %v1306_v12 = vpop.f32.mrb[7].mxu1 }
 0x6b0   : > { %v775_v13 = vpop.f32.mrb[8].mxu1 }
 0x6b1   : > { %v1311_v14 = vpop.f32.mrb[9].mxu1  ;;  %v779_v15 = vsel %vm450_vm4, %v775_v13, -inf }
 0x6b2   : > { %780 = vmax.xlane.f32.xlu0 %v779_v15 }
 0x6c8   : > { %790 = vrot.lane.b32.xlu0 %v1736_v41, %s1529_s6  ;;  %s188_s6 = scalar_lea.vmem [#allocation2], %s1217_s28 }
 0x6cc   : > { %866 = vrot.lane.b32.xlu0 %v1740_v43, %s1531_s8 }
 0x73f   : > { %v781_v16 = vpop.xlane.xlu0 %780 }
 0x740   : > { %v782_v17 = vsub.f32 %v775_v13, %v781_v16 }
 0x742   : > { %v783_v18 = vmul.f32 1.442695, %v782_v17 }
 0x743   : > { %v791_v19 = vpop.permute.xlu0 %790 }
 0x744   : > { %1451 = vpow2.f32 %v783_v18  ;;  %1313 = vmatpush3.msra.mxu1 %v791_v19 }
 0x745   : > { %1317 = vmatprep.subr.mxu1 %v1524_v5 }
 0x747   : > { %v867_v26 = vpop.permute.xlu0 %866 }
 0x74e   : > { %v1452_v20 = vpop.eup %1451 }
 0x74f   : > { %v785_v21 = vsel %vm450_vm4, %v1452_v20, 0.0 }
 0x750   : > { %786 = vadd.xlane.f32.xlu1 %v785_v21 }
 0x761   : > { %868 = vrot.lane.b32.xlu1 %v1731_v40, %s1532_s9 }
 0x7dd   : > { %v787_v22 = vpop.xlane.xlu1 %786 }
 0x7de   : > { %1453 = vrcp.f32 %v787_v22 }
 0x7e1   : > { %v869_v25 = vpop.permute.xlu1 %868 }
 0x7e8   : > { %v1454_v23 = vpop.eup %1453 }
 0x7e9   : > { %v789_v24 = vmul.f32 %v1454_v23, %v1452_v20 }
 0x7eb   : > { %1315 = vmatmul.mubr.msk.f32.vlgmr.msra.gmra.mrb[10].mxu1 %vm450_vm4, %v789_v24 }
 0x7ec   : > { %1318 = vmatpush3.xpose.msk.msra.mxu1 %vm374_vm3, %v869_v25  ;;  %1319 = vmatprep.mubr.msk.f32.mxu1 %vm1525_vm2, %v1524_v5 }
 0x7ed   : > { %1322 = vmatprep.subr.mxu1 %v1524_v5 }
 0x7ef   : > { %1320 = vmatmul.mubr.msk.f32.vlgmr.msra.gmra.mrb[12].mxu1 %vm374_vm3, %v867_v26 }
 0x7f0   : > { %1324 = vmatprep.mubr.msk.f32.mxu1 %vm1525_vm2, %v1524_v5 }
 0x8be   : > { %v862_v27 = vpop.f32.mrb[10].mxu1 }
 0x8bf   : > { %v1316_v28 = vpop.f32.mrb[11].mxu1 }
 0x8c2   : > { %v940_v29 = vpop.f32.mrb[12].mxu1 }
 0x8c3   : > { %v1321_v30 = vpop.f32.mrb[13].mxu1  ;;  %v944_v31 = vsel %vm450_vm4, %v940_v29, -inf }
 0x8c4   : > { %945 = vmax.xlane.f32.xlu0 %v944_v31 }
 0x8da   : > { %955 = vrot.lane.b32.xlu0 %v1736_v41, %s1531_s8  ;;  %v218_v41 = vld [vmem:[%s1876_s2] sm:$0xff] }
 0x8db   : > { %v1387_v43 = vpack.c.bf16 %v219_v42, %v218_v41 }
 0x8de   : > { %1036 = vrot.lane.b32.xlu0 %v862_v27, %s1530_s7  ;;  %s1154_s7 = sshll.u32 %s188_s6, 4  ;;  %s1833_s7 = int_to_ptr.vmem [resolvable:$true] %s1154_s7 }
 0x8df   : > { %s1459_s12 = scalar_lea.vmem %s1833_s7, 128 }
 0x8e0   : > { %p1460_p11 = scmp.ne.s32.totalorder %s1833_s7, %s1459_s12 }
 0x8e2   : > { %p1461_p12 = pnand %p1460_p11, %p1597_p5 }
 0x8e4   : > { %p1462_p13 = pneg %p1461_p12 }
 0x951   : > { %v946_v32 = vpop.xlane.xlu0 %945 }
 0x952   : > { %v947_v33 = vsub.f32 %v940_v29, %v946_v32 }
 0x954   : > { %v948_v34 = vmul.f32 1.442695, %v947_v33 }
 0x955   : > { %v956_v35 = vpop.permute.xlu0 %955 }
 0x956   : > { %1455 = vpow2.f32 %v948_v34  ;;  %1323 = vmatpush3.msra.mxu1 %v956_v35 }
 0x957   : > { %1386 = vmatprep.subr.bf16.mxu1 %v1523_v2 }
 0x959   : > { %v1037_v49 = vpop.permute.xlu0 %1036 }
 0x960   : > { %v1456_v36 = vpop.eup %1455 }
 0x961   : > { %v950_v37 = vsel %vm450_vm4, %v1456_v36, 0.0 }
 0x962   : > { %951 = vadd.xlane.f32.xlu1 %v950_v37 }
 0x973   : > { %1032 = vrot.lane.b32.xlu1 %v697_v11, %s1532_s9 }
 0x9ef   : > { %v952_v38 = vpop.xlane.xlu1 %951 }
 0x9f0   : > { %1457 = vrcp.f32 %v952_v38 }
 0x9f3   : > { %v1033_v48 = vpop.permute.xlu1 %1032 }
 0x9fa   : > { %v1458_v39 = vpop.eup %1457 }
 0x9fb   : > { %v954_v40 = vmul.f32 %v1458_v39, %v1456_v36 }
 0x9fd   : > { %1325 = vmatmul.mubr.msk.f32.vlgmr.msra.gmra.mrb[14].mxu1 %vm450_vm4, %v954_v40 }
 0x9fe   : > { %1335 = vmatprep.mubr.msk.f32.mxu1 %vm1525_vm2, %v1524_v5  ;;  %1389 = vmatpush3.bf16.xpose.msk.msra.mxu1 %vm1388_vm6, %v1387_v43  ;;  %v220_v5 = vld [vmem:[%s1876_s2 + $0x10] sm:$0xff] }
 0x9ff   : > { %1390 = vmatprep.subr.bf16.mxu1 %v1523_v2  ;;  %v1391_v45 = vpack.c.bf16 %v221_v44, %v220_v5  ;;  %v1043_v2 = vsel %vm374_vm3, %v1762_v58, %v1033_v48 }
 0xa00   : > { %v1044_v50 = vsel %vm223_vm0, %v1043_v2, %v1037_v49 }
 0xa06   : > { %1393 = vmatpush3.bf16.xpose.msk.msra.mxu1 %vm1388_vm6, %v1391_v45 }
 0xad0   : > { %v1027_v46 = vpop.f32.mrb[14].mxu1 }
 0xad1   : > { %1040 = vrot.lane.b32.xlu0 %v1027_v46, %s1526_s29  ;;  %v1326_v47 = vpop.f32.mrb[15].mxu1  ;;  %s1263_s29 = sshll.u32 %s1580_s19, 7  ;;  %s1533_s19 = smov [#allocation2]  }
 0xad2   : > { %s1831_s10 = scalar_lea.hbm %s1878_s4, %s1263_s29  ;;  %s1463_s13 = sshll.u32 %s1533_s19, 4  ;;  %s1464_s13 = int_to_ptr.vmem [resolvable:$false] %s1463_s13 }
 0xad3   : > { %s1465_s14 = scalar_lea.vmem %s1464_s13, 256  ;;  %p1466_p0 = scmp.lt.s32.totalorder %s1833_s7, %s1464_s13 }
 0xad4   : > { %p1467_p1 = scmp.lt.s32.totalorder %s1465_s14, %s1459_s12 }
 0xad6   : > { %p1468_p2 = por %p1467_p1, %p1466_p0 }
 0xad8   : > { %p1469_p3 = pnand %p1468_p2, %p1462_p13 }
 0xb43   : > { %v1041_v51 = vpop.permute.xlu0 %1040 }
 0xb44   : > { %v1046_v52 = vsel %vm1045_vm7, %v1044_v50, %v1041_v51 }
 0xb45   : > { %1336 = vmatmul.mubr.msk.f32.vlgmr.msra.gmra.mrb[16].mxu1 %vm1053_vm5, %v1046_v52 }
 0xc18   : > { %v1135_v54 = vpop.f32.mrb[16].mxu1 }
 0xc19   : > { %v1136_v55 = vadd.f32 %v1256_v53, %v1135_v54  ;;  %v1337_v56 = vpop.f32.mrb[17].mxu1 }
 0xc1b   : > { %1139 = vst.msk [vmem:[%s188_s6] sm:$0xff] %vm223_vm0, %v1136_v55 }
 0xc1c   : > { %1472 = shalt.err (!%p1469_p3)
}
 0xc1d   : > { %s1473_s20 = scalar_lea.hbm %s1831_s10, 128  ;;  %s1477_s27 = scalar_lea.hbm %s1878_s4, 256 }
 0xc1e   : > { %p1474_p4 = scmp.ne.s32.totalorder %s1831_s10, %s1473_s20  ;;  %p1478_p9 = scmp.lt.u32.totalorder %s1831_s10, %s1878_s4 }
 0xc1f   : > { %p1479_p10 = scmp.lt.u32.totalorder %s1477_s27, %s1473_s20  ;;  %p1481_p12 = scmp.lt.u32.totalorder %s1473_s20, %s1831_s10 }
 0xc20   : > { %p1475_p7 = pnand %p1474_p4, %p1597_p5 }
 0xc21   : > { %p1480_p11 = por %p1479_p10, %p1478_p9 }
 0xc22   : > { %p1476_p8 = pneg %p1475_p7 }
 0xc23   : > { %p1482_p13 = por %p1481_p12, %p1480_p11 }
 0xc25   : > { %p1483_p0 = pnand %p1482_p13, %p1476_p8 }
 0xc27   : > { %1486 = shalt.err (!%p1483_p0)
}
 0xc28   : > { %1394 = dma.vmem_to_hbm [thread:$0]  (%p1597_p5), %s1833_s7, 128, %s1831_s10, %s1141_s11  }
 0xc29 PF: > { %p1400_p1 = scmp.ge.s32.totalorder %s1521_s18, 2  ;;  %s1166_s5 = sand.u32 1, %s1509_s15  }
 0xc2a   : > { %s1167_s29 = scalar_lea.sflag [#allocation3], %s1166_s5 }
 0xc2b   : > { %p1397_p2 = pnand %p1400_p1, %p1601_p6 }
 0xc2d   : > { %1504 = dma.done.wait (!%p1397_p2), %s1167_s29, 128  }
 0xc2e   : > { %1506 = vsyncadd (!%p1397_p2), %s1167_s29, 4294967168  ;;  %p14_p3 = scmp.ge.s32.totalorder %s1584_s21, 4   ;;  %s1883_s15 = smov %s1513_s16 }
 0xc2f   : > { %s1884_s16 = smov %s1517_s17  ;;  %s1885_s17 = smov %s1595_s24 }
 0xc30   : > { %s1886_s18 = smov %s1584_s21  ;;  %16 = sbr.rel (!%p14_p3) target bundleno = 3 (0x3), region = 71 }
 0xc37   :  { %1172 = vsyncpa [#allocation3], 1 }
 0xc38   :  { %1174 = vsyncpa [#allocation3 + $0x1], 1 }

</bundles_post_ra>
